<compile_context>
chip_gen: v7x
topology: tpu7x:2x2x1
jax: 0.10.0
libtpu: 0.0.40
codegen_flags: <defaults>
</compile_context>

<pallas_src>
import jax
import jax.numpy as jnp
from jax.experimental import pallas as pl
from jax.experimental.pallas import tpu as pltpu


def mlp_kernel(x_ref, w1a_ref, w2t_ref, b2_ref, o_ref):
    # Layer 1 + bias (bias folded into augmented K): (Hp, F+1) @ (F+1, TB) -> (Hp, TB),
    # f32 accumulation on the MXU.
    h = jnp.dot(w1a_ref[...], x_ref[...], preferred_element_type=jnp.float32)
    h = jnp.maximum(h, 0.0)  # the only remaining full (Hp, TB) VALU pass
    # Layer 2 on the MXU: (1, Hp) @ (Hp, TB) -> (1, TB).
    y = jnp.dot(w2t_ref[...], h, preferred_element_type=jnp.float32)
    y = y + b2_ref[0, 0]  # SMEM scalar bias
    o_ref[...] = jax.nn.sigmoid(y).astype(o_ref.dtype)


def red_neuronal_forward(x, w1, b1, w2, b2, *, block_b=32768,
                         x_feature_major=False, x_dtype=jnp.float32):
    """Forward pass of RedNeuronal.

    x: (B, 4) (or (4, B) if x_feature_major=True).
    w1: (4, 50), b1: (50,), w2: (50, 1), b2: (1,)  [w1/w2 transposed vs nn.Linear.weight]
    Returns (B, 1) f32 = sigmoid(relu(x @ W1 + b1) @ W2 + b2).
    """
    if x_feature_major:
        F, B = x.shape
    else:
        B, F = x.shape
    H = w1.shape[1]
    Hp = ((H + 7) // 8) * 8   # 50 -> 56: clean sublane multiple; padded rows are zero.
    Fa = F + 1                # augmented contraction dim (bias row).

    # ---- weights (tiny; constant block index -> VMEM-resident, no per-step re-DMA) ----
    w1t = jnp.asarray(w1, jnp.float32).T                                   # (H, F)
    b1c = jnp.asarray(b1, jnp.float32).reshape(H, 1)
    w1a_p = jnp.pad(jnp.concatenate([w1t, b1c], axis=1),
                    ((0, Hp - H), (0, 0))).astype(x_dtype)                 # (Hp, F+1)
    w2t_p = jnp.pad(jnp.asarray(w2, jnp.float32).reshape(H, 1).T,
                    ((0, 0), (0, Hp - H)))                                 # (1, Hp) f32
    b2_s = jnp.asarray(b2, jnp.float32).reshape(1, 1)

    # ---- lane tiling: batch lives in the lane (last) dimension ----
    b_rounded = pl.cdiv(B, 128) * 128
    tb = min(block_b, b_rounded)
    tb = max(128, (tb // 128) * 128)  # force a 128 multiple (lane-dense, unmasked stores)
    if b_rounded >= 2 * 128 and b_rounded // tb < 2:
        # Guarantee >=2 grid steps so the "parallel" axis can span both v7x TensorCores.
        tb = max(128, ((b_rounded // 2) // 128) * 128)
    b_pad = pl.cdiv(b_rounded, tb) * tb

    # ---- input: feature-major with a ones (bias) row; single pad pass, no zeros+set ----
    xt = jnp.asarray(x, x_dtype) if x_feature_major else jnp.asarray(x, x_dtype).T  # (F, B)
    xt = jnp.concatenate([xt, jnp.ones((1, B), x_dtype)], axis=0)                    # (F+1, B)
    xt = jnp.pad(xt, ((0, 0), (0, b_pad - B)))                                       # (F+1, b_pad)
    # TODO(synk): biggest end-to-end win is the producer emitting x feature-major (and in
    # bf16) so this transpose/pad never materializes in HBM.

    # ---- VMEM budget: dominated by the (Hp, TB) f32 hidden intermediate ----
    x_bytes = jnp.dtype(x_dtype).itemsize
    est = (2 * Hp * tb * 4            # h + matmul-result headroom
           + 2 * Fa * tb * x_bytes    # double-buffered x tiles
           + 2 * tb * 4               # double-buffered output tiles
           + Hp * (Fa + 1) * 4)       # weights
    vmem_limit = int(min(max(2 * est + (4 << 20), 32 << 20), 48 << 20))

    grid = (b_pad // tb,)
    out = pl.pallas_call(
        mlp_kernel,
        out_shape=jax.ShapeDtypeStruct((1, b_pad), jnp.float32),
        grid=grid,
        in_specs=[
            # x^T tile: lane-dense (F+1, TB), new block per grid step.
            pl.BlockSpec((Fa, tb), lambda i: (0, i)),
            # [W1^T | b1] and W2^T: constant block index -> VMEM-resident.
            pl.BlockSpec((Hp, Fa), lambda i: (0, 0)),
            pl.BlockSpec((1, Hp), lambda i: (0, 0)),
            # Scalar output bias in SMEM.
            pl.BlockSpec(memory_space=pltpu.MemorySpace.SMEM),
        ],
        out_specs=pl.BlockSpec((1, tb), lambda i: (0, i)),
        compiler_params=pltpu.CompilerParams(
            dimension_semantics=("parallel",),
            vmem_limit_bytes=vmem_limit,
        ),
    )(xt, w1a_p, w2t_p, b2_s)

    return out[0, :B].reshape(B, 1)


def init_params(key):
    # Deterministic init mimicking torch.nn.Linear default (uniform(-1/sqrt(fan_in), +)).
    k1, k2, k3, k4 = jax.random.split(key, 4)
    bound1 = 1.0 / jnp.sqrt(4.0)
    w1 = jax.random.uniform(k1, (4, 50), jnp.float32, -bound1, bound1)
    b1 = jax.random.uniform(k2, (50,), jnp.float32, -bound1, bound1)
    bound2 = 1.0 / jnp.sqrt(50.0)
    w2 = jax.random.uniform(k3, (50, 1), jnp.float32, -bound2, bound2)
    b2 = jax.random.uniform(k4, (1,), jnp.float32, -bound2, bound2)
    return w1, b1, w2, b2


if __name__ == "__main__":
    key = jax.random.PRNGKey(0)
    k_x, k_p = jax.random.split(key)

    w1, b1, w2, b2 = init_params(k_p)

    def ref_fwd(x):
        return jax.nn.sigmoid(jnp.maximum(x @ w1 + b1, 0.0) @ w2 + b2)

    # Small batch (single grid step).
    x_small = jax.random.normal(k_x, (8, 4), jnp.float32)
    out_small = red_neuronal_forward(x_small, w1, b1, w2, b2)
    jax.block_until_ready(out_small)
    assert out_small.shape == (8, 1)
    assert jnp.allclose(out_small, ref_fwd(x_small), atol=1e-5), "mismatch vs reference (small)"

    # Ragged batch: multiple grid steps + non-128-multiple block_b rounding.
    x_big = jax.random.normal(k_x, (300, 4), jnp.float32)
    out_big = red_neuronal_forward(x_big, w1, b1, w2, b2, block_b=200)
    jax.block_until_ready(out_big)
    assert out_big.shape == (300, 1)
    assert jnp.allclose(out_big, ref_fwd(x_big), atol=1e-5), "mismatch vs reference (gridded)"

    # bf16-input path (halves x HBM read; f32 MXU accumulation keeps it close).
    out_bf16 = red_neuronal_forward(x_big, w1, b1, w2, b2, x_dtype=jnp.bfloat16)
    jax.block_until_ready(out_bf16)
    assert out_bf16.shape == (300, 1)
    assert jnp.allclose(out_bf16, ref_fwd(x_big), atol=3e-2), "mismatch vs reference (bf16)"

    # Feature-major producer path (skips the wrapper-side transpose materialization).
    out_fm = red_neuronal_forward(x_big.T, w1, b1, w2, b2, x_feature_major=True)
    jax.block_until_ready(out_fm)
    assert jnp.allclose(out_fm, ref_fwd(x_big), atol=1e-5), "mismatch vs reference (feature-major)"

    print("KERNEL_OK")
</pallas_src>

<mosaic_0001>
module attributes {stable_mosaic.version = 11 : i64} {
  func.func @mlp_kernel(%arg0: i32, %arg1: memref<5x128xf32, #tpu.memory_space<vmem>>, %arg2: memref<56x5xf32, #tpu.memory_space<vmem>>, %arg3: memref<1x56xf32, #tpu.memory_space<vmem>>, %arg4: memref<1x1xf32, #tpu.memory_space<smem>>, %arg5: memref<1x128xf32, #tpu.memory_space<vmem>>) attributes {dimension_semantics = [#tpu.dimension_semantics<parallel>], iteration_bounds = array<i64: 1>, scalar_prefetch = 0 : i64, scratch_operands = 0 : i64, tpu.core_type = #tpu.core_type<tc>, window_params = [{transform_indices = @transform_0, window_bounds = array<i64: 5, 128>}, {pipeline_mode = #tpu.pipeline_mode<synchronous>, transform_indices = @transform_1, window_bounds = array<i64: 56, 5>}, {pipeline_mode = #tpu.pipeline_mode<synchronous>, transform_indices = @transform_2, window_bounds = array<i64: 1, 56>}, {transform_indices = @transform_3, window_bounds = array<i64: 1, 1>}, {transform_indices = @transform_4, window_bounds = array<i64: 1, 128>}]} {
    %c0 = arith.constant 0 : index
    %c0_0 = arith.constant 0 : index
    %0 = vector.load %arg2[%c0, %c0_0] : memref<56x5xf32, #tpu.memory_space<vmem>>, vector<56x5xf32>
    %c0_1 = arith.constant 0 : index
    %c0_2 = arith.constant 0 : index
    %1 = vector.load %arg1[%c0_1, %c0_2] : memref<5x128xf32, #tpu.memory_space<vmem>>, vector<5x128xf32>
    %cst = arith.constant dense<0.000000e+00> : vector<56x128xf32>
    %2 = tpu.matmul %0, %1, %cst {dimension_numbers = #tpu.dot_dimension_numbers<[1], [0], [0], [1], [0, 0, 1, 1], [], []>} : vector<56x5xf32>, vector<5x128xf32>, vector<56x128xf32> -> vector<56x128xf32>
    %cst_3 = arith.constant 0.000000e+00 : f32
    %3 = vector.broadcast %cst_3 : f32 to vector<56x128xf32>
    %4 = arith.maximumf %2, %3 : vector<56x128xf32>
    %c0_4 = arith.constant 0 : index
    %c0_5 = arith.constant 0 : index
    %5 = vector.load %arg3[%c0_4, %c0_5] : memref<1x56xf32, #tpu.memory_space<vmem>>, vector<1x56xf32>
    %cst_6 = arith.constant dense<0.000000e+00> : vector<1x128xf32>
    %6 = tpu.matmul %5, %4, %cst_6 {dimension_numbers = #tpu.dot_dimension_numbers<[1], [0], [0], [1], [0, 0, 1, 1], [], []>} : vector<1x56xf32>, vector<56x128xf32>, vector<1x128xf32> -> vector<1x128xf32>
    %c0_7 = arith.constant 0 : index
    %c0_8 = arith.constant 0 : index
    %7 = memref.load %arg4[%c0_7, %c0_8] : memref<1x1xf32, #tpu.memory_space<smem>>
    %8 = vector.broadcast %7 : f32 to vector<1x128xf32>
    %9 = arith.addf %6, %8 : vector<1x128xf32>
    %10 = arith.negf %9 : vector<1x128xf32>
    %11 = math.exp %10 : vector<1x128xf32>
    %cst_9 = arith.constant 1.000000e+00 : f32
    %12 = vector.broadcast %cst_9 : f32 to vector<1x128xf32>
    %13 = arith.addf %12, %11 : vector<1x128xf32>
    %14 = arith.divf %12, %13 : vector<1x128xf32>
    %c0_10 = arith.constant 0 : index
    %c0_11 = arith.constant 0 : index
    %15 = vector.load %arg5[%c0_10, %c0_11] : memref<1x128xf32, #tpu.memory_space<vmem>>, vector<1x128xf32>
    tpu.vector_store %arg5[%c0_10, %c0_11], %14 {strides = array<i32>} : memref<1x128xf32, #tpu.memory_space<vmem>>, vector<1x128xf32>,
    return
  }
  func.func @transform_0(%arg0: i32) -> (i32, i32) {
    %c0_i32 = arith.constant 0 : i32
    %c0_i32_0 = arith.constant 0 : i32
    return %c0_i32, %arg0 : i32, i32
  }
  func.func @transform_1(%arg0: i32) -> (i32, i32) {
    %c0_i32 = arith.constant 0 : i32
    %c0_i32_0 = arith.constant 0 : i32
    %c0_i32_1 = arith.constant 0 : i32
    return %c0_i32, %c0_i32_0 : i32, i32
  }
  func.func @transform_2(%arg0: i32) -> (i32, i32) {
    %c0_i32 = arith.constant 0 : i32
    %c0_i32_0 = arith.constant 0 : i32
    %c0_i32_1 = arith.constant 0 : i32
    return %c0_i32, %c0_i32_0 : i32, i32
  }
  func.func @transform_3(%arg0: i32) -> (i32, i32) {
    %c0_i32 = arith.constant 0 : i32
    %c0_i32_0 = arith.constant 0 : i32
    %c0_i32_1 = arith.constant 0 : i32
    return %c0_i32, %c0_i32_0 : i32, i32
  }
  func.func @transform_4(%arg0: i32) -> (i32, i32) {
    %c0_i32 = arith.constant 0 : i32
    %c0_i32_0 = arith.constant 0 : i32
    return %c0_i32, %arg0 : i32, i32
  }
}

</mosaic_0001>

<bundles_post_ra>
// kernel: tpu_custom_call.1
= control target key start
LH: loop header
LB: loop body
LE: loop exit
PB: predicated region body
PF: predicated region fallthrough
CT: control target
= control target key end

     0   :  { %vm49_vm0 = vcmask 1044480   ;;  %v365_v2 = vmov 0.0   ;;  %vm366_vm1 = vmmov 0   ;;  %vm27_vm2 = vcmask 39936   ;;  %s451_s0 = inlined_call_operand.vmem [shape: f32[5,128], index: 0, kind: input, shape index: {}]   ;;  %s452_s1 = inlined_call_operand.vmem [shape: f32[56,5], index: 1, kind: input, shape index: {}]   ;;  %s453_s2 = inlined_call_operand.vmem [shape: f32[1,56], index: 2, kind: input, shape index: {}]   ;;  %s454_s3 = inlined_call_operand.<no memory space> [shape: f32[1,1], index: 3, kind: input, shape index: {}]   ;;  %s455_s4 = inlined_call_operand.hbm [shape: f32[1,128], index: 4, kind: output, shape index: {}]  }
   0x1   :  { %v26_v0 = vld [vmem:[%s451_s0] sm:$0x1f]  ;;  %284 = vmatprep.subr.mxu0 %v365_v2  ;;  %286 = vmatprep.mubr.msk.f32.mxu0 %vm366_vm1, %v365_v2 }
   0x2   :  { %v19_v1 = vld [vmem:[%s452_s1] sm:$0xff]  ;;  %285 = vmatpush3.msk.msra.mxu0 %vm49_vm0, %v26_v0  ;;  %321 = vmatprep.mubr.msk.f32.mxu1 %vm366_vm1, %v365_v2 }
   0x3   :  { %287 = vmatmul.mubr.msk.f32.vlgmr.msra.gmra.mrb[0].mxu0 %vm27_vm2, %v19_v1 }
   0x4   :  { %10 = vsyncpa [#allocation4], 0  ;;  %289 = vmatprep.mubr.msk.f32.mxu0 %vm366_vm1, %v365_v2  ;;  %v20_v3 = vld [vmem:[%s452_s1 + $0x8] sm:$0xff]  ;;  %v21_v4 = vld [vmem:[%s452_s1 + $0x10] sm:$0xff]  ;;  %v367_v9 = vmov 0.0|0.0   ;;  %vm163_vm3 = vcmask 457728   ;;  %v162_v35 = vstv %s454_s3 }
   0x5   :  { %v22_v5 = vld [vmem:[%s452_s1 + $0x18] sm:$0xff]  ;;  %v23_v6 = vld [vmem:[%s452_s1 + $0x20] sm:$0xff]  ;;  %v24_v7 = vld [vmem:[%s452_s1 + $0x28] sm:$0xff]  ;;  %324 = vmatprep.subr.bf16.mxu1 %v367_v9  ;;  %s368_s7 = smov [#allocation3]  }
   0x6   :  { %v25_v8 = vld [vmem:[%s452_s1 + $0x30] sm:$0xff]  ;;  %v160_v34 = vld [vmem:[%s453_s2] sm:$0x1]  ;;  %s250_s8 = sshll.u32 %s368_s7, 4  ;;  %s251_s8 = int_to_ptr.vmem [resolvable:$true] %s250_s8 }
   0x7   :  { %290 = vmatmul.mubr.msk.f32.gmra.mrb[2].mxu0 %vm27_vm2, %v20_v3  ;;  %s341_s2 = scalar_lea.vmem %s251_s8, 16  ;;  %s345_s9 = scalar_lea.vmem %s251_s8, 32 }
   0x8   :  { %292 = vmatprep.mubr.msk.f32.mxu0 %vm366_vm1, %v365_v2  ;;  %p342_p0 = scmp.ne.s32.totalorder %s251_s8, %s341_s2  ;;  %p346_p1 = scmp.lt.s32.totalorder %s251_s8, %s251_s8 }
   0x9   :  { %p347_p2 = scmp.lt.s32.totalorder %s345_s9, %s341_s2 }
   0xb   :  { %293 = vmatmul.mubr.msk.f32.gmra.mrb[4].mxu0 %vm27_vm2, %v21_v4  ;;  %p348_p3 = por %p347_p2, %p346_p1 }
   0xc   :  { %295 = vmatprep.mubr.msk.f32.mxu0 %vm366_vm1, %v365_v2 }
   0xd   :  { %p349_p4 = pnand %p348_p3, %p342_p0 }
   0xf   :  { %296 = vmatmul.mubr.msk.f32.gmra.mrb[6].mxu0 %vm27_vm2, %v22_v5 }
  0x10   :  { %298 = vmatprep.mubr.msk.f32.mxu0 %vm366_vm1, %v365_v2 }
  0x13   :  { %299 = vmatmul.mubr.msk.f32.gmra.mrb[8].mxu0 %vm27_vm2, %v23_v6 }
  0x14   :  { %301 = vmatprep.mubr.msk.f32.mxu0 %vm366_vm1, %v365_v2 }
  0x17   :  { %302 = vmatmul.mubr.msk.f32.gmra.mrb[10].mxu0 %vm27_vm2, %v24_v7 }
  0x18   :  { %304 = vmatprep.mubr.msk.f32.mxu0 %vm366_vm1, %v365_v2 }
  0x1b   :  { %305 = vmatmul.mubr.msk.f32.gmra.mrb[12].mxu0 %vm27_vm2, %v25_v8 }
  0xd6   :  { %v119_v10 = vpop.f32.mrb[0].mxu0 }
  0xd7   :  { %v288_v11 = vpop.f32.mrb[1].mxu0  ;;  %v153_v13 = vmax.f32 %v119_v10, 0.0 }
  0xda   :  { %v124_v12 = vpop.f32.mrb[2].mxu0 }
  0xdb   :  { %v154_v14 = vmax.f32 %v124_v12, 0.0  ;;  %v291_v15 = vpop.f32.mrb[3].mxu0 }
  0xdd   :  { %v325_v16 = vpack.c.bf16 %v154_v14, %v153_v13 }
  0xde   :  { %v129_v17 = vpop.f32.mrb[4].mxu0 }
  0xdf   :  { %v294_v18 = vpop.f32.mrb[5].mxu0  ;;  %326 = vmatpush3.bf16.msra.mxu1 %v325_v16  ;;  %v155_v20 = vmax.f32 %v129_v17, 0.0 }
  0xe0   :  { %327 = vmatprep.subr.bf16.mxu1 %v367_v9 }
  0xe2   :  { %v134_v19 = vpop.f32.mrb[6].mxu0 }
  0xe3   :  { %v156_v21 = vmax.f32 %v134_v19, 0.0  ;;  %v297_v22 = vpop.f32.mrb[7].mxu0 }
  0xe5   :  { %v328_v23 = vpack.c.bf16 %v156_v21, %v155_v20 }
  0xe6   :  { %v139_v24 = vpop.f32.mrb[8].mxu0 }
  0xe7   :  { %v300_v25 = vpop.f32.mrb[9].mxu0  ;;  %329 = vmatpush3.bf16.msra.mxu1 %v328_v23  ;;  %v157_v27 = vmax.f32 %v139_v24, 0.0 }
  0xe8   :  { %330 = vmatprep.subr.bf16.mxu1 %v367_v9 }
  0xea   :  { %v144_v26 = vpop.f32.mrb[10].mxu0 }
  0xeb   :  { %v158_v28 = vmax.f32 %v144_v26, 0.0  ;;  %v303_v29 = vpop.f32.mrb[11].mxu0 }
  0xed   :  { %v331_v30 = vpack.c.bf16 %v158_v28, %v157_v27 }
  0xee   :  { %v149_v31 = vpop.f32.mrb[12].mxu0 }
  0xef   :  { %v159_v32 = vmax.f32 %v149_v31, 0.0  ;;  %332 = vmatpush3.bf16.msra.mxu1 %v331_v30  ;;  %v306_v33 = vpop.f32.mrb[13].mxu0 }
  0xf0   :  { %319 = vmatprep.subr.mxu1 %v365_v2 }
  0xf3   :  { %320 = vmatpush3.msra.mxu1 %v159_v32 }
  0xf4   :  { %322 = vmatmul.mubr.msk.f32.vlgmr.msra.gmra.mrb[0].mxu1 %vm163_vm3, %v160_v34 }
 0x1c7   :  { %v233_v36 = vpop.f32.mrb[0].mxu1 }
 0x1c8   :  { %v234_v37 = vadd.f32 %v233_v36, %v162_v35  ;;  %v323_v38 = vpop.f32.mrb[1].mxu1 }
 0x1ca   :  { %v267_v39 = vmul.f32 -1.442695, %v234_v37 }
 0x1cc   :  { %337 = vpow2.f32 %v267_v39 }
 0x1d6   :  { %v338_v40 = vpop.eup %337 }
 0x1d7   :  { %v240_v41 = vadd.f32 1.0, %v338_v40 }
 0x1d9   :  { %339 = vrcp.f32 %v240_v41 }
 0x1e3   :  { %v340_v42 = vpop.eup %339 }
 0x1e4   :  { %243 = vst [vmem:[#allocation3] sm:$0x1] %v340_v42 }
 0x1e5   :  { %352 = shalt.err (!%p349_p4)
}
 0x1e6   :  { %s353_s11 = scalar_lea.hbm %s455_s4, 16 }
 0x1e7   :  { %p354_p5 = scmp.ne.s32.totalorder %s455_s4, %s353_s11  ;;  %p357_p6 = scmp.lt.u32.totalorder %s353_s11, %s455_s4 }
 0x1e9   :  { %p359_p7 = pnand %p357_p6, %p354_p5 }
 0x1eb   :  { %362 = shalt.err (!%p359_p7)
}
 0x1ec   :  { %253 = dma.vmem_to_hbm [thread:$0]  %s251_s8, 16, %s455_s4, [#allocation4]  }
 0x1ed   :  { %363 = dma.done.wait [#allocation4], 16  }
 0x1ee   :  { %364 = vsyncadd [#allocation4], 4294967280 }
 0x1ef   :  { %257 = vsyncpa [#allocation4], 1 }

</bundles_post_ra>
